<compile_context>
chip_gen: v5e
topology: v5e:2x2
jax: 0.10.0
libtpu: 0.0.40
codegen_flags: <defaults>
</compile_context>

<pallas_src>
import functools

import jax
import jax.numpy as jnp
import numpy as np
from jax import lax
from jax.experimental import pallas as pl
from jax.experimental.pallas import tpu as pltpu


# -----------------------------------------------------------------------------
# Fused kernel: one batch element per grid step, all heads inside the block.
# -----------------------------------------------------------------------------
def fused_slice_attention_kernel(x_ref, wscore_ref, bscore_ref, wvkv_ref, bvkv_ref,
                                 wq_ref, wk_ref, wv_ref, wout_ref, bout_ref,
                                 out_ref, aux_ref):
    H, _, M = wscore_ref.shape
    D = wq_ref.shape[-1]
    _, N, HID = x_ref.shape
    AUXW = aux_ref.shape[-1]
    scale = float(D) ** (-0.5)

    x2d = x_ref[0]                                                  # (N, HID)
    ones_n1 = jnp.ones((N, 1), jnp.float32)

    out_heads = []
    for h in range(H):  # small static unroll (H=4); see TODO for larger H
        # --- slice scores in (N, M) layout; softmax over slice axis = lanes.
        # wt_kv_proj K-half is folded into wscore/bscore at trace time, so this
        # is a single K=HID matmul and no lane-slicing of a kv result is needed.
        st = jnp.dot(x2d, wscore_ref[h], preferred_element_type=jnp.float32)
        st = st + bscore_ref[h]                                     # (N, M)
        st = st - jnp.max(st, axis=-1, keepdims=True)
        se = jnp.exp(st)
        sw_t = se / jnp.sum(se, axis=-1, keepdims=True)             # (N, M) exact

        # --- V projection for this head (K=HID matmul, pre-split weights).
        xv_h = jnp.dot(x2d, wvkv_ref[h], preferred_element_type=jnp.float32)
        xv_h = xv_h + bvkv_ref[h]                                   # (N, D)

        # --- slice-token aggregation + normalization, straight from (N, M)
        #     (contract over N; no transpose of sw is ever materialized).
        slice_token = lax.dot_general(sw_t, xv_h, (((0,), (0,)), ((), ())),
                                      preferred_element_type=jnp.float32)   # (M, D)
        norm = lax.dot_general(sw_t, ones_n1, (((0,), (0,)), ((), ())),
                               preferred_element_type=jnp.float32)          # (M, 1)
        slice_token = slice_token / (norm + 1e-05)

        # --- per-head q/k/v projections (pre-split at trace time; fine at D=8).
        q_t = jnp.dot(slice_token, wq_ref[h], preferred_element_type=jnp.float32)
        k_t = jnp.dot(slice_token, wk_ref[h], preferred_element_type=jnp.float32)
        v_t = jnp.dot(slice_token, wv_ref[h], preferred_element_type=jnp.float32)

        # --- inner MHA over slice tokens.
        dots = lax.dot_general(q_t, k_t, (((1,), (1,)), ((), ())),
                               preferred_element_type=jnp.float32) * scale  # (M, M)
        dots = dots - jnp.max(dots, axis=-1, keepdims=True)
        de = jnp.exp(dots)
        attn = de / jnp.sum(de, axis=-1, keepdims=True)             # (M, M) exact
        out_token = jnp.dot(attn, v_t, preferred_element_type=jnp.float32)  # (M, D)

        # --- scatter back to the sequence for this head: (N,M)@(M,D) -> (N,D).
        out_heads.append(jnp.dot(sw_t, out_token,
                                 preferred_element_type=jnp.float32))

        # --- aux slab: [sw_t ; attn] stacked on sublanes, zero-padded to a
        #     128-lane-wide tile -> one unmasked, lane-dense store per head.
        tile = jnp.concatenate([sw_t, attn], axis=0)                # (N+M, M)
        pad = jnp.zeros((N + M, AUXW - M), jnp.float32)
        aux_ref[0, h] = jnp.concatenate([tile, pad], axis=-1)       # (N+M, AUXW)

    # 'b h n d -> b n (h d)' as a lane concat, then a single to_out matmul
    # with contraction dim HID, written once.
    out_all = jnp.concatenate(out_heads, axis=-1)                   # (N, HID)
    out_ref[0] = (jnp.dot(out_all, wout_ref[...],
                          preferred_element_type=jnp.float32)
                  + bout_ref[...])                                  # (N, HID)


def _fused_slice_attention(x, wscore, bscore, wvkv, bvkv, wq, wk, wv,
                           w_out, b_out2d, aux_lanes):
    B, N, HID = x.shape
    H, _, M = wscore.shape
    D = wvkv.shape[-1]
    out_shapes = (
        jax.ShapeDtypeStruct((B, N, HID), jnp.float32),
        jax.ShapeDtypeStruct((B, H, N + M, aux_lanes), jnp.float32),
    )
    return pl.pallas_call(
        fused_slice_attention_kernel,
        out_shape=out_shapes,
        grid=(B,),
        in_specs=[
            pl.BlockSpec((1, N, HID), lambda b: (b, 0, 0)),          # x
            pl.BlockSpec((H, HID, M), lambda b: (0, 0, 0)),          # Wscore (folded)
            pl.BlockSpec((H, 1, M), lambda b: (0, 0, 0)),            # bscore (folded)
            pl.BlockSpec((H, HID, D), lambda b: (0, 0, 0)),          # V-half of w_kv
            pl.BlockSpec((H, 1, D), lambda b: (0, 0, 0)),            # V-half of b_kv
            pl.BlockSpec((H, D, D), lambda b: (0, 0, 0)),            # Wq per head
            pl.BlockSpec((H, D, D), lambda b: (0, 0, 0)),            # Wk per head
            pl.BlockSpec((H, D, D), lambda b: (0, 0, 0)),            # Wv per head
            pl.BlockSpec((HID, HID), lambda b: (0, 0)),              # w_out
            pl.BlockSpec((1, HID), lambda b: (0, 0)),                # b_out
        ],
        out_specs=(
            pl.BlockSpec((1, N, HID), lambda b: (b, 0, 0)),
            pl.BlockSpec((1, H, N + M, aux_lanes), lambda b: (b, 0, 0, 0)),
        ),
        compiler_params=pltpu.CompilerParams(
            dimension_semantics=("parallel",),
        ),
    )(x, wscore, bscore, wvkv, bvkv, wq, wk, wv, w_out, b_out2d)


# -----------------------------------------------------------------------------
# Full module forward (trace-time weight folding + kernel call + aux unpack).
# -----------------------------------------------------------------------------
def slice_attention_forward(params, x, num_heads):
    B, N, HID = x.shape
    H = num_heads
    assert HID % H == 0
    D = HID // H
    wtq = params["wtq"]                          # (H, M, D)
    M = wtq.shape[1]

    # Fold the K-half of wt_kv_proj into the slice-score weights:
    #   st_h = (x @ Wk_h + bk_h) @ wtq_h.T == x @ (Wk_h @ wtq_h.T) + bk_h @ wtq_h.T
    Wk_full, Wv_full = jnp.split(params["w_kv"], 2, axis=-1)   # (HID, HID) each
    bk, bv = jnp.split(params["b_kv"], 2)                      # (HID,) each
    Wk_heads = Wk_full.reshape(HID, H, D)
    wscore = jnp.einsum("ihd,hmd->him", Wk_heads, wtq)         # (H, HID, M)
    bscore = jnp.einsum("hd,hmd->hm", bk.reshape(H, D), wtq).reshape(H, 1, M)
    wvkv = Wv_full.reshape(HID, H, D).transpose(1, 0, 2)       # (H, HID, D)
    bvkv = bv.reshape(H, 1, D)

    wq, wk, wv = jnp.split(params["qkv_proj"], 3, axis=-1)     # (H, D, D) each
    b_out2d = params["b_out"].reshape(1, HID)

    aux_lanes = max(128, ((M + 127) // 128) * 128)
    out, aux = _fused_slice_attention(x, wscore, bscore, wvkv, bvkv,
                                      wq, wk, wv, params["w_out"], b_out2d,
                                      aux_lanes)

    # Unpack the lane-dense aux slab (tiny tensors; trace-time slices/transpose).
    slice_weights = jnp.swapaxes(aux[:, :, :N, :M], -1, -2)    # (B, H, M, N)
    attn_weights = aux[:, :, N:N + M, :M]                      # (B, H, M, M)
    temperature = jnp.array(1.0, dtype=jnp.float32)
    bias = params["wtq_bias"][..., None]                       # (H, M, 1) (returned only)
    return out, slice_weights, temperature, bias, attn_weights


# Pure-JAX reference for validation (matches the PyTorch module semantics).
def reference_forward(params, x, num_heads):
    B, N, HID = x.shape
    D = HID // num_heads
    xkv = x @ params["w_kv"] + params["b_kv"]
    xk_f, xv_f = jnp.split(xkv, 2, axis=-1)
    xk = xk_f.reshape(B, N, num_heads, D).transpose(0, 2, 1, 3)
    xv = xv_f.reshape(B, N, num_heads, D).transpose(0, 2, 1, 3)
    xq = params["wtq"]
    scores = jnp.einsum("hmd,bhnd->bhmn", xq, xk)
    sw = jax.nn.softmax(scores, axis=-2)
    st = jnp.einsum("bhmn,bhnd->bhmd", sw, xv)
    st = st / (sw.sum(-1, keepdims=True) + 1e-05)
    qkv = jnp.einsum("bhmd,hde->bhme", st, params["qkv_proj"])
    q_t, k_t, v_t = jnp.split(qkv, 3, axis=-1)
    dots = jnp.einsum("bhqd,bhkd->bhqk", q_t, k_t) * (D ** -0.5)
    attn = jax.nn.softmax(dots, axis=-1)
    out_t = jnp.einsum("bhqk,bhkd->bhqd", attn, v_t)
    out = jnp.einsum("bhmd,bhmn->bhnd", out_t, sw)
    out = out.transpose(0, 2, 1, 3).reshape(B, N, HID)
    out = out @ params["w_out"] + params["b_out"]
    return out, sw, attn


if __name__ == "__main__":
    # Small shapes consistent with the module.
    batch, seq, hidden = 2, 8, 32
    num_heads, num_slices = 4, 16
    head_dim = hidden // num_heads

    key = jax.random.PRNGKey(0)
    ks = jax.random.split(key, 8)

    params = {
        # Linear weights stored as (in, out); torch Linear is y = x @ W.T + b.
        "w_kv": 0.02 * jax.random.normal(ks[0], (hidden, 2 * hidden), jnp.float32),
        "b_kv": 0.01 * jax.random.normal(ks[1], (2 * hidden,), jnp.float32),
        "wtq": 0.02 * jax.random.normal(ks[2], (num_heads, num_slices, head_dim), jnp.float32),
        "wtq_bias": jnp.zeros((num_heads, num_slices), jnp.float32),
        "qkv_proj": 0.02 * jax.random.normal(ks[3], (num_heads, head_dim, 3 * head_dim), jnp.float32),
        "w_out": 0.02 * jax.random.normal(ks[4], (hidden, hidden), jnp.float32),
        "b_out": 0.01 * jax.random.normal(ks[5], (hidden,), jnp.float32),
    }
    x = jax.random.normal(ks[6], (batch, seq, hidden), jnp.float32)

    fwd = jax.jit(functools.partial(slice_attention_forward, num_heads=num_heads))
    out, sw, temperature, bias, attn_w = fwd(params, x)
    jax.block_until_ready(out)

    # Validate against a pure-JAX reference (exact divisions in the kernel, so
    # only matmul-reassociation error remains -> tight tolerances).
    ref_out, ref_sw, ref_attn = reference_forward(params, x, num_heads)
    np.testing.assert_allclose(np.asarray(sw), np.asarray(ref_sw), rtol=1e-3, atol=1e-5)
    np.testing.assert_allclose(np.asarray(attn_w), np.asarray(ref_attn), rtol=1e-3, atol=1e-5)
    np.testing.assert_allclose(np.asarray(out), np.asarray(ref_out), rtol=1e-3, atol=1e-5)

    assert out.shape == (batch, seq, hidden)
    assert sw.shape == (batch, num_heads, num_slices, seq)
    assert attn_w.shape == (batch, num_heads, num_slices, num_slices)
    assert bias.shape == (num_heads, num_slices, 1)
    assert float(temperature) == 1.0

    print("KERNEL_OK")
</pallas_src>

<mosaic_0001>
module attributes {stable_mosaic.version = 11 : i64} {
  func.func @fused_slice_attention_kernel(%arg0: i32, %arg1: memref<1x8x32xf32, #tpu.memory_space<vmem>>, %arg2: memref<4x32x16xf32, #tpu.memory_space<vmem>>, %arg3: memref<4x1x16xf32, #tpu.memory_space<vmem>>, %arg4: memref<4x32x8xf32, #tpu.memory_space<vmem>>, %arg5: memref<4x1x8xf32, #tpu.memory_space<vmem>>, %arg6: memref<4x8x8xf32, #tpu.memory_space<vmem>>, %arg7: memref<4x8x8xf32, #tpu.memory_space<vmem>>, %arg8: memref<4x8x8xf32, #tpu.memory_space<vmem>>, %arg9: memref<32x32xf32, #tpu.memory_space<vmem>>, %arg10: memref<1x32xf32, #tpu.memory_space<vmem>>, %arg11: memref<1x8x32xf32, #tpu.memory_space<vmem>>, %arg12: memref<1x4x24x128xf32, #tpu.memory_space<vmem>>) attributes {dimension_semantics = [#tpu.dimension_semantics<parallel>], iteration_bounds = array<i64: 2>, scalar_prefetch = 0 : i64, scratch_operands = 0 : i64, tpu.core_type = #tpu.core_type<tc>, window_params = [{transform_indices = @transform_0, window_bounds = array<i64: 1, 8, 32>}, {pipeline_mode = #tpu.pipeline_mode<synchronous>, transform_indices = @transform_1, window_bounds = array<i64: 4, 32, 16>}, {pipeline_mode = #tpu.pipeline_mode<synchronous>, transform_indices = @transform_2, window_bounds = array<i64: 4, 1, 16>}, {pipeline_mode = #tpu.pipeline_mode<synchronous>, transform_indices = @transform_3, window_bounds = array<i64: 4, 32, 8>}, {pipeline_mode = #tpu.pipeline_mode<synchronous>, transform_indices = @transform_4, window_bounds = array<i64: 4, 1, 8>}, {pipeline_mode = #tpu.pipeline_mode<synchronous>, transform_indices = @transform_5, window_bounds = array<i64: 4, 8, 8>}, {pipeline_mode = #tpu.pipeline_mode<synchronous>, transform_indices = @transform_6, window_bounds = array<i64: 4, 8, 8>}, {pipeline_mode = #tpu.pipeline_mode<synchronous>, transform_indices = @transform_7, window_bounds = array<i64: 4, 8, 8>}, {pipeline_mode = #tpu.pipeline_mode<synchronous>, transform_indices = @transform_8, window_bounds = array<i64: 32, 32>}, {pipeline_mode = #tpu.pipeline_mode<synchronous>, transform_indices = @transform_9, window_bounds = array<i64: 1, 32>}, {transform_indices = @transform_10, window_bounds = array<i64: 1, 8, 32>}, {transform_indices = @transform_11, window_bounds = array<i64: 1, 4, 24, 128>}]} {
    %c0 = arith.constant 0 : index
    %c0_0 = arith.constant 0 : index
    %c0_1 = arith.constant 0 : index
    %0 = vector.load %arg1[%c0, %c0_0, %c0_1] : memref<1x8x32xf32, #tpu.memory_space<vmem>>, vector<1x8x32xf32>
    %1 = vector.shape_cast %0 : vector<1x8x32xf32> to vector<8x32xf32>
    %cst = arith.constant 1.000000e+00 : f32
    %2 = vector.broadcast %cst : f32 to vector<8x1xf32>
    %c0_2 = arith.constant 0 : index
    %c0_3 = arith.constant 0 : index
    %c0_4 = arith.constant 0 : index
    %3 = vector.load %arg2[%c0_2, %c0_3, %c0_4] : memref<4x32x16xf32, #tpu.memory_space<vmem>>, vector<1x32x16xf32>
    %4 = vector.shape_cast %3 : vector<1x32x16xf32> to vector<32x16xf32>
    %cst_5 = arith.constant dense<0.000000e+00> : vector<8x16xf32>
    %5 = tpu.matmul %1, %4, %cst_5 {dimension_numbers = #tpu.dot_dimension_numbers<[1], [0], [0], [1], [0, 0, 1, 1], [], []>} : vector<8x32xf32>, vector<32x16xf32>, vector<8x16xf32> -> vector<8x16xf32>
    %c0_6 = arith.constant 0 : index
    %c0_7 = arith.constant 0 : index
    %c0_8 = arith.constant 0 : index
    %6 = vector.load %arg3[%c0_6, %c0_7, %c0_8] : memref<4x1x16xf32, #tpu.memory_space<vmem>>, vector<1x1x16xf32>
    %7 = vector.shape_cast %6 : vector<1x1x16xf32> to vector<1x16xf32>
    %8 = vector.broadcast %7 : vector<1x16xf32> to vector<8x16xf32>
    %9 = arith.addf %5, %8 : vector<8x16xf32>
    %cst_9 = arith.constant dense<0xFF800000> : vector<8xf32>
    %10 = vector.multi_reduction <maximumf>, %9, %cst_9 [1] : vector<8x16xf32> to vector<8xf32>
    %11 = vector.shape_cast %10 : vector<8xf32> to vector<8x1xf32>
    %12 = vector.broadcast %11 : vector<8x1xf32> to vector<8x16xf32>
    %13 = arith.subf %9, %12 : vector<8x16xf32>
    %14 = math.exp %13 : vector<8x16xf32>
    %cst_10 = arith.constant dense<0.000000e+00> : vector<8xf32>
    %15 = vector.multi_reduction <add>, %14, %cst_10 [1] : vector<8x16xf32> to vector<8xf32>
    %16 = vector.shape_cast %15 : vector<8xf32> to vector<8x1xf32>
    %17 = vector.broadcast %16 : vector<8x1xf32> to vector<8x16xf32>
    %18 = arith.divf %14, %17 : vector<8x16xf32>
    %c0_11 = arith.constant 0 : index
    %c0_12 = arith.constant 0 : index
    %c0_13 = arith.constant 0 : index
    %19 = vector.load %arg4[%c0_11, %c0_12, %c0_13] : memref<4x32x8xf32, #tpu.memory_space<vmem>>, vector<1x32x8xf32>
    %20 = vector.shape_cast %19 : vector<1x32x8xf32> to vector<32x8xf32>
    %cst_14 = arith.constant dense<0.000000e+00> : vector<8x8xf32>
    %21 = tpu.matmul %1, %20, %cst_14 {dimension_numbers = #tpu.dot_dimension_numbers<[1], [0], [0], [1], [0, 0, 1, 1], [], []>} : vector<8x32xf32>, vector<32x8xf32>, vector<8x8xf32> -> vector<8x8xf32>
    %c0_15 = arith.constant 0 : index
    %c0_16 = arith.constant 0 : index
    %c0_17 = arith.constant 0 : index
    %22 = vector.load %arg5[%c0_15, %c0_16, %c0_17] : memref<4x1x8xf32, #tpu.memory_space<vmem>>, vector<1x1x8xf32>
    %23 = vector.shape_cast %22 : vector<1x1x8xf32> to vector<1x8xf32>
    %24 = vector.broadcast %23 : vector<1x8xf32> to vector<8x8xf32>
    %25 = arith.addf %21, %24 : vector<8x8xf32>
    %cst_18 = arith.constant dense<0.000000e+00> : vector<16x8xf32>
    %26 = tpu.matmul %18, %25, %cst_18 {dimension_numbers = #tpu.dot_dimension_numbers<[0], [0], [1], [1], [0, 1, 1, 1], [], []>} : vector<8x16xf32>, vector<8x8xf32>, vector<16x8xf32> -> vector<16x8xf32>
    %cst_19 = arith.constant dense<0.000000e+00> : vector<16x1xf32>
    %27 = tpu.matmul %18, %2, %cst_19 {dimension_numbers = #tpu.dot_dimension_numbers<[0], [0], [1], [1], [0, 1, 1, 1], [], []>} : vector<8x16xf32>, vector<8x1xf32>, vector<16x1xf32> -> vector<16x1xf32>
    %cst_20 = arith.constant 9.99999974E-6 : f32
    %28 = vector.broadcast %cst_20 : f32 to vector<16x1xf32>
    %29 = arith.addf %27, %28 : vector<16x1xf32>
    %30 = vector.broadcast %29 : vector<16x1xf32> to vector<16x8xf32>
    %31 = arith.divf %26, %30 : vector<16x8xf32>
    %c0_21 = arith.constant 0 : index
    %c0_22 = arith.constant 0 : index
    %c0_23 = arith.constant 0 : index
    %32 = vector.load %arg6[%c0_21, %c0_22, %c0_23] : memref<4x8x8xf32, #tpu.memory_space<vmem>>, vector<1x8x8xf32>
    %33 = vector.shape_cast %32 : vector<1x8x8xf32> to vector<8x8xf32>
    %cst_24 = arith.constant dense<0.000000e+00> : vector<16x8xf32>
    %34 = tpu.matmul %31, %33, %cst_24 {dimension_numbers = #tpu.dot_dimension_numbers<[1], [0], [0], [1], [0, 0, 1, 1], [], []>} : vector<16x8xf32>, vector<8x8xf32>, vector<16x8xf32> -> vector<16x8xf32>
    %c0_25 = arith.constant 0 : index
    %c0_26 = arith.constant 0 : index
    %c0_27 = arith.constant 0 : index
    %35 = vector.load %arg7[%c0_25, %c0_26, %c0_27] : memref<4x8x8xf32, #tpu.memory_space<vmem>>, vector<1x8x8xf32>
    %36 = vector.shape_cast %35 : vector<1x8x8xf32> to vector<8x8xf32>
    %cst_28 = arith.constant dense<0.000000e+00> : vector<16x8xf32>
    %37 = tpu.matmul %31, %36, %cst_28 {dimension_numbers = #tpu.dot_dimension_numbers<[1], [0], [0], [1], [0, 0, 1, 1], [], []>} : vector<16x8xf32>, vector<8x8xf32>, vector<16x8xf32> -> vector<16x8xf32>
    %c0_29 = arith.constant 0 : index
    %c0_30 = arith.constant 0 : index
    %c0_31 = arith.constant 0 : index
    %38 = vector.load %arg8[%c0_29, %c0_30, %c0_31] : memref<4x8x8xf32, #tpu.memory_space<vmem>>, vector<1x8x8xf32>
    %39 = vector.shape_cast %38 : vector<1x8x8xf32> to vector<8x8xf32>
    %cst_32 = arith.constant dense<0.000000e+00> : vector<16x8xf32>
    %40 = tpu.matmul %31, %39, %cst_32 {dimension_numbers = #tpu.dot_dimension_numbers<[1], [0], [0], [1], [0, 0, 1, 1], [], []>} : vector<16x8xf32>, vector<8x8xf32>, vector<16x8xf32> -> vector<16x8xf32>
    %cst_33 = arith.constant dense<0.000000e+00> : vector<16x16xf32>
    %41 = tpu.matmul %34, %37, %cst_33 {dimension_numbers = #tpu.dot_dimension_numbers<[1], [1], [0], [0], [0, 0, 1, 0], [], []>} : vector<16x8xf32>, vector<16x8xf32>, vector<16x16xf32> -> vector<16x16xf32>
    %cst_34 = arith.constant 0.353553385 : f32
    %42 = vector.broadcast %cst_34 : f32 to vector<16x16xf32>
    %43 = arith.mulf %41, %42 : vector<16x16xf32>
    %cst_35 = arith.constant dense<0xFF800000> : vector<16xf32>
    %44 = vector.multi_reduction <maximumf>, %43, %cst_35 [1] : vector<16x16xf32> to vector<16xf32>
    %45 = vector.shape_cast %44 : vector<16xf32> to vector<16x1xf32>
    %46 = vector.broadcast %45 : vector<16x1xf32> to vector<16x16xf32>
    %47 = arith.subf %43, %46 : vector<16x16xf32>
    %48 = math.exp %47 : vector<16x16xf32>
    %cst_36 = arith.constant dense<0.000000e+00> : vector<16xf32>
    %49 = vector.multi_reduction <add>, %48, %cst_36 [1] : vector<16x16xf32> to vector<16xf32>
    %50 = vector.shape_cast %49 : vector<16xf32> to vector<16x1xf32>
    %51 = vector.broadcast %50 : vector<16x1xf32> to vector<16x16xf32>
    %52 = arith.divf %48, %51 : vector<16x16xf32>
    %cst_37 = arith.constant dense<0.000000e+00> : vector<16x8xf32>
    %53 = tpu.matmul %52, %40, %cst_37 {dimension_numbers = #tpu.dot_dimension_numbers<[1], [0], [0], [1], [0, 0, 1, 1], [], []>} : vector<16x16xf32>, vector<16x8xf32>, vector<16x8xf32> -> vector<16x8xf32>
    %cst_38 = arith.constant dense<0.000000e+00> : vector<8x8xf32>
    %54 = tpu.matmul %18, %53, %cst_38 {dimension_numbers = #tpu.dot_dimension_numbers<[1], [0], [0], [1], [0, 0, 1, 1], [], []>} : vector<8x16xf32>, vector<16x8xf32>, vector<8x8xf32> -> vector<8x8xf32>
    %55 = tpu.concatenate %18, %52 in 0 : vector<8x16xf32>, vector<16x16xf32> -> vector<24x16xf32>
    %cst_39 = arith.constant 0.000000e+00 : f32
    %56 = vector.broadcast %cst_39 : f32 to vector<24x112xf32>
    %57 = tpu.concatenate %55, %56 in 1 : vector<24x16xf32>, vector<24x112xf32> -> vector<24x128xf32>
    %c0_40 = arith.constant 0 : index
    %c0_41 = arith.constant 0 : index
    %c0_42 = arith.constant 0 : index
    %c0_43 = arith.constant 0 : index
    %58 = vector.load %arg12[%c0_40, %c0_41, %c0_42, %c0_43] : memref<1x4x24x128xf32, #tpu.memory_space<vmem>>, vector<1x1x24x128xf32>
    %59 = vector.shape_cast %58 : vector<1x1x24x128xf32> to vector<24x128xf32>
    %60 = vector.shape_cast %57 : vector<24x128xf32> to vector<1x1x24x128xf32>
    tpu.vector_store %arg12[%c0_40, %c0_41, %c0_42, %c0_43], %60 {strides = array<i32>} : memref<1x4x24x128xf32, #tpu.memory_space<vmem>>, vector<1x1x24x128xf32>,
    %c1 = arith.constant 1 : index
    %c0_44 = arith.constant 0 : index
    %c0_45 = arith.constant 0 : index
    %61 = vector.load %arg2[%c1, %c0_44, %c0_45] : memref<4x32x16xf32, #tpu.memory_space<vmem>>, vector<1x32x16xf32>
    %62 = vector.shape_cast %61 : vector<1x32x16xf32> to vector<32x16xf32>
    %cst_46 = arith.constant dense<0.000000e+00> : vector<8x16xf32>
    %63 = tpu.matmul %1, %62, %cst_46 {dimension_numbers = #tpu.dot_dimension_numbers<[1], [0], [0], [1], [0, 0, 1, 1], [], []>} : vector<8x32xf32>, vector<32x16xf32>, vector<8x16xf32> -> vector<8x16xf32>
    %c1_47 = arith.constant 1 : index
    %c0_48 = arith.constant 0 : index
    %c0_49 = arith.constant 0 : index
    %64 = vector.load %arg3[%c1_47, %c0_48, %c0_49] : memref<4x1x16xf32, #tpu.memory_space<vmem>>, vector<1x1x16xf32>
    %65 = vector.shape_cast %64 : vector<1x1x16xf32> to vector<1x16xf32>
    %66 = vector.broadcast %65 : vector<1x16xf32> to vector<8x16xf32>
    %67 = arith.addf %63, %66 : vector<8x16xf32>
    %cst_50 = arith.constant dense<0xFF800000> : vector<8xf32>
    %68 = vector.multi_reduction <maximumf>, %67, %cst_50 [1] : vector<8x16xf32> to vector<8xf32>
    %69 = vector.shape_cast %68 : vector<8xf32> to vector<8x1xf32>
    %70 = vector.broadcast %69 : vector<8x1xf32> to vector<8x16xf32>
    %71 = arith.subf %67, %70 : vector<8x16xf32>
    %72 = math.exp %71 : vector<8x16xf32>
    %cst_51 = arith.constant dense<0.000000e+00> : vector<8xf32>
    %73 = vector.multi_reduction <add>, %72, %cst_51 [1] : vector<8x16xf32> to vector<8xf32>
    %74 = vector.shape_cast %73 : vector<8xf32> to vector<8x1xf32>
    %75 = vector.broadcast %74 : vector<8x1xf32> to vector<8x16xf32>
    %76 = arith.divf %72, %75 : vector<8x16xf32>
    %c1_52 = arith.constant 1 : index
    %c0_53 = arith.constant 0 : index
    %c0_54 = arith.constant 0 : index
    %77 = vector.load %arg4[%c1_52, %c0_53, %c0_54] : memref<4x32x8xf32, #tpu.memory_space<vmem>>, vector<1x32x8xf32>
    %78 = vector.shape_cast %77 : vector<1x32x8xf32> to vector<32x8xf32>
    %cst_55 = arith.constant dense<0.000000e+00> : vector<8x8xf32>
    %79 = tpu.matmul %1, %78, %cst_55 {dimension_numbers = #tpu.dot_dimension_numbers<[1], [0], [0], [1], [0, 0, 1, 1], [], []>} : vector<8x32xf32>, vector<32x8xf32>, vector<8x8xf32> -> vector<8x8xf32>
    %c1_56 = arith.constant 1 : index
    %c0_57 = arith.constant 0 : index
    %c0_58 = arith.constant 0 : index
    %80 = vector.load %arg5[%c1_56, %c0_57, %c0_58] : memref<4x1x8xf32, #tpu.memory_space<vmem>>, vector<1x1x8xf32>
    %81 = vector.shape_cast %80 : vector<1x1x8xf32> to vector<1x8xf32>
    %82 = vector.broadcast %81 : vector<1x8xf32> to vector<8x8xf32>
    %83 = arith.addf %79, %82 : vector<8x8xf32>
    %cst_59 = arith.constant dense<0.000000e+00> : vector<16x8xf32>
    %84 = tpu.matmul %76, %83, %cst_59 {dimension_numbers = #tpu.dot_dimension_numbers<[0], [0], [1], [1], [0, 1, 1, 1], [], []>} : vector<8x16xf32>, vector<8x8xf32>, vector<16x8xf32> -> vector<16x8xf32>
    %cst_60 = arith.constant dense<0.000000e+00> : vector<16x1xf32>
    %85 = tpu.matmul %76, %2, %cst_60 {dimension_numbers = #tpu.dot_dimension_numbers<[0], [0], [1], [1], [0, 1, 1, 1], [], []>} : vector<8x16xf32>, vector<8x1xf32>, vector<16x1xf32> -> vector<16x1xf32>
    %cst_61 = arith.constant 9.99999974E-6 : f32
    %86 = vector.broadcast %cst_61 : f32 to vector<16x1xf32>
    %87 = arith.addf %85, %86 : vector<16x1xf32>
    %88 = vector.broadcast %87 : vector<16x1xf32> to vector<16x8xf32>
    %89 = arith.divf %84, %88 : vector<16x8xf32>
    %c1_62 = arith.constant 1 : index
    %c0_63 = arith.constant 0 : index
    %c0_64 = arith.constant 0 : index
    %90 = vector.load %arg6[%c1_62, %c0_63, %c0_64] : memref<4x8x8xf32, #tpu.memory_space<vmem>>, vector<1x8x8xf32>
    %91 = vector.shape_cast %90 : vector<1x8x8xf32> to vector<8x8xf32>
    %cst_65 = arith.constant dense<0.000000e+00> : vector<16x8xf32>
    %92 = tpu.matmul %89, %91, %cst_65 {dimension_numbers = #tpu.dot_dimension_numbers<[1], [0], [0], [1], [0, 0, 1, 1], [], []>} : vector<16x8xf32>, vector<8x8xf32>, vector<16x8xf32> -> vector<16x8xf32>
    %c1_66 = arith.constant 1 : index
    %c0_67 = arith.constant 0 : index
    %c0_68 = arith.constant 0 : index
    %93 = vector.load %arg7[%c1_66, %c0_67, %c0_68] : memref<4x8x8xf32, #tpu.memory_space<vmem>>, vector<1x8x8xf32>
    %94 = vector.shape_cast %93 : vector<1x8x8xf32> to vector<8x8xf32>
    %cst_69 = arith.constant dense<0.000000e+00> : vector<16x8xf32>
    %95 = tpu.matmul %89, %94, %cst_69 {dimension_numbers = #tpu.dot_dimension_numbers<[1], [0], [0], [1], [0, 0, 1, 1], [], []>} : vector<16x8xf32>, vector<8x8xf32>, vector<16x8xf32> -> vector<16x8xf32>
    %c1_70 = arith.constant 1 : index
    %c0_71 = arith.constant 0 : index
    %c0_72 = arith.constant 0 : index
    %96 = vector.load %arg8[%c1_70, %c0_71, %c0_72] : memref<4x8x8xf32, #tpu.memory_space<vmem>>, vector<1x8x8xf32>
    %97 = vector.shape_cast %96 : vector<1x8x8xf32> to vector<8x8xf32>
    %cst_73 = arith.constant dense<0.000000e+00> : vector<16x8xf32>
    %98 = tpu.matmul %89, %97, %cst_73 {dimension_numbers = #tpu.dot_dimension_numbers<[1], [0], [0], [1], [0, 0, 1, 1], [], []>} : vector<16x8xf32>, vector<8x8xf32>, vector<16x8xf32> -> vector<16x8xf32>
    %cst_74 = arith.constant dense<0.000000e+00> : vector<16x16xf32>
    %99 = tpu.matmul %92, %95, %cst_74 {dimension_numbers = #tpu.dot_dimension_numbers<[1], [1], [0], [0], [0, 0, 1, 0], [], []>} : vector<16x8xf32>, vector<16x8xf32>, vector<16x16xf32> -> vector<16x16xf32>
    %cst_75 = arith.constant 0.353553385 : f32
    %100 = vector.broadcast %cst_75 : f32 to vector<16x16xf32>
    %101 = arith.mulf %99, %100 : vector<16x16xf32>
    %cst_76 = arith.constant dense<0xFF800000> : vector<16xf32>
    %102 = vector.multi_reduction <maximumf>, %101, %cst_76 [1] : vector<16x16xf32> to vector<16xf32>
    %103 = vector.shape_cast %102 : vector<16xf32> to vector<16x1xf32>
    %104 = vector.broadcast %103 : vector<16x1xf32> to vector<16x16xf32>
    %105 = arith.subf %101, %104 : vector<16x16xf32>
    %106 = math.exp %105 : vector<16x16xf32>
    %cst_77 = arith.constant dense<0.000000e+00> : vector<16xf32>
    %107 = vector.multi_reduction <add>, %106, %cst_77 [1] : vector<16x16xf32> to vector<16xf32>
    %108 = vector.shape_cast %107 : vector<16xf32> to vector<16x1xf32>
    %109 = vector.broadcast %108 : vector<16x1xf32> to vector<16x16xf32>
    %110 = arith.divf %106, %109 : vector<16x16xf32>
    %cst_78 = arith.constant dense<0.000000e+00> : vector<16x8xf32>
    %111 = tpu.matmul %110, %98, %cst_78 {dimension_numbers = #tpu.dot_dimension_numbers<[1], [0], [0], [1], [0, 0, 1, 1], [], []>} : vector<16x16xf32>, vector<16x8xf32>, vector<16x8xf32> -> vector<16x8xf32>
    %cst_79 = arith.constant dense<0.000000e+00> : vector<8x8xf32>
    %112 = tpu.matmul %76, %111, %cst_79 {dimension_numbers = #tpu.dot_dimension_numbers<[1], [0], [0], [1], [0, 0, 1, 1], [], []>} : vector<8x16xf32>, vector<16x8xf32>, vector<8x8xf32> -> vector<8x8xf32>
    %113 = tpu.concatenate %76, %110 in 0 : vector<8x16xf32>, vector<16x16xf32> -> vector<24x16xf32>
    %cst_80 = arith.constant 0.000000e+00 : f32
    %114 = vector.broadcast %cst_80 : f32 to vector<24x112xf32>
    %115 = tpu.concatenate %113, %114 in 1 : vector<24x16xf32>, vector<24x112xf32> -> vector<24x128xf32>
    %c0_81 = arith.constant 0 : index
    %c1_82 = arith.constant 1 : index
    %c0_83 = arith.constant 0 : index
    %c0_84 = arith.constant 0 : index
    %116 = vector.load %arg12[%c0_81, %c1_82, %c0_83, %c0_84] : memref<1x4x24x128xf32, #tpu.memory_space<vmem>>, vector<1x1x24x128xf32>
    %117 = vector.shape_cast %116 : vector<1x1x24x128xf32> to vector<24x128xf32>
    %118 = vector.shape_cast %115 : vector<24x128xf32> to vector<1x1x24x128xf32>
    tpu.vector_store %arg12[%c0_81, %c1_82, %c0_83, %c0_84], %118 {strides = array<i32>} : memref<1x4x24x128xf32, #tpu.memory_space<vmem>>, vector<1x1x24x128xf32>,
    %c2 = arith.constant 2 : index
    %c0_85 = arith.constant 0 : index
    %c0_86 = arith.constant 0 : index
    %119 = vector.load %arg2[%c2, %c0_85, %c0_86] : memref<4x32x16xf32, #tpu.memory_space<vmem>>, vector<1x32x16xf32>
    %120 = vector.shape_cast %119 : vector<1x32x16xf32> to vector<32x16xf32>
    %cst_87 = arith.constant dense<0.000000e+00> : vector<8x16xf32>
    %121 = tpu.matmul %1, %120, %cst_87 {dimension_numbers = #tpu.dot_dimension_numbers<[1], [0], [0], [1], [0, 0, 1, 1], [], []>} : vector<8x32xf32>, vector<32x16xf32>, vector<8x16xf32> -> vector<8x16xf32>
    %c2_88 = arith.constant 2 : index
    %c0_89 = arith.constant 0 : index
    %c0_90 = arith.constant 0 : index
    %122 = vector.load %arg3[%c2_88, %c0_89, %c0_90] : memref<4x1x16xf32, #tpu.memory_space<vmem>>, vector<1x1x16xf32>
    %123 = vector.shape_cast %122 : vector<1x1x16xf32> to vector<1x16xf32>
    %124 = vector.broadcast %123 : vector<1x16xf32> to vector<8x16xf32>
    %125 = arith.addf %121, %124 : vector<8x16xf32>
    %cst_91 = arith.constant dense<0xFF800000> : vector<8xf32>
    %126 = vector.multi_reduction <maximumf>, %125, %cst_91 [1] : vector<8x16xf32> to vector<8xf32>
    %127 = vector.shape_cast %126 : vector<8xf32> to vector<8x1xf32>
    %128 = vector.broadcast %127 : vector<8x1xf32> to vector<8x16xf32>
    %129 = arith.subf %125, %128 : vector<8x16xf32>
    %130 = math.exp %129 : vector<8x16xf32>
    %cst_92 = arith.constant dense<0.000000e+00> : vector<8xf32>
    %131 = vector.multi_reduction <add>, %130, %cst_92 [1] : vector<8x16xf32> to vector<8xf32>
    %132 = vector.shape_cast %131 : vector<8xf32> to vector<8x1xf32>
    %133 = vector.broadcast %132 : vector<8x1xf32> to vector<8x16xf32>
    %134 = arith.divf %130, %133 : vector<8x16xf32>
    %c2_93 = arith.constant 2 : index
    %c0_94 = arith.constant 0 : index
    %c0_95 = arith.constant 0 : index
    %135 = vector.load %arg4[%c2_93, %c0_94, %c0_95] : memref<4x32x8xf32, #tpu.memory_space<vmem>>, vector<1x32x8xf32>
    %136 = vector.shape_cast %135 : vector<1x32x8xf32> to vector<32x8xf32>
    %cst_96 = arith.constant dense<0.000000e+00> : vector<8x8xf32>
    %137 = tpu.matmul %1, %136, %cst_96 {dimension_numbers = #tpu.dot_dimension_numbers<[1], [0], [0], [1], [0, 0, 1, 1], [], []>} : vector<8x32xf32>, vector<32x8xf32>, vector<8x8xf32> -> vector<8x8xf32>
    %c2_97 = arith.constant 2 : index
    %c0_98 = arith.constant 0 : index
    %c0_99 = arith.constant 0 : index
    %138 = vector.load %arg5[%c2_97, %c0_98, %c0_99] : memref<4x1x8xf32, #tpu.memory_space<vmem>>, vector<1x1x8xf32>
    %139 = vector.shape_cast %138 : vector<1x1x8xf32> to vector<1x8xf32>
    %140 = vector.broadcast %139 : vector<1x8xf32> to vector<8x8xf32>
    %141 = arith.addf %137, %140 : vector<8x8xf32>
    %cst_100 = arith.constant dense<0.000000e+00> : vector<16x8xf32>
    %142 = tpu.matmul %134, %141, %cst_100 {dimension_numbers = #tpu.dot_dimension_numbers<[0], [0], [1], [1], [0, 1, 1, 1], [], []>} : vector<8x16xf32>, vector<8x8xf32>, vector<16x8xf32> -> vector<16x8xf32>
    %cst_101 = arith.constant dense<0.000000e+00> : vector<16x1xf32>
    %143 = tpu.matmul %134, %2, %cst_101 {dimension_numbers = #tpu.dot_dimension_numbers<[0], [0], [1], [1], [0, 1, 1, 1], [], []>} : vector<8x16xf32>, vector<8x1xf32>, vector<16x1xf32> -> vector<16x1xf32>
    %cst_102 = arith.constant 9.99999974E-6 : f32
    %144 = vector.broadcast %cst_102 : f32 to vector<16x1xf32>
    %145 = arith.addf %143, %144 : vector<16x1xf32>
    %146 = vector.broadcast %145 : vector<16x1xf32> to vector<16x8xf32>
    %147 = arith.divf %142, %146 : vector<16x8xf32>
    %c2_103 = arith.constant 2 : index
    %c0_104 = arith.constant 0 : index
    %c0_105 = arith.constant 0 : index
    %148 = vector.load %arg6[%c2_103, %c0_104, %c0_105] : memref<4x8x8xf32, #tpu.memory_space<vmem>>, vector<1x8x8xf32>
    %149 = vector.shape_cast %148 : vector<1x8x8xf32> to vector<8x8xf32>
    %cst_106 = arith.constant dense<0.000000e+00> : vector<16x8xf32>
    %150 = tpu.matmul %147, %149, %cst_106 {dimension_numbers = #tpu.dot_dimension_numbers<[1], [0], [0], [1], [0, 0, 1, 1], [], []>} : vector<16x8xf32>, vector<8x8xf32>, vector<16x8xf32> -> vector<16x8xf32>
    %c2_107 = arith.constant 2 : index
    %c0_108 = arith.constant 0 : index
    %c0_109 = arith.constant 0 : index
    %151 = vector.load %arg7[%c2_107, %c0_108, %c0_109] : memref<4x8x8xf32, #tpu.memory_space<vmem>>, vector<1x8x8xf32>
    %152 = vector.shape_cast %151 : vector<1x8x8xf32> to vector<8x8xf32>
    %cst_110 = arith.constant dense<0.000000e+00> : vector<16x8xf32>
    %153 = tpu.matmul %147, %152, %cst_110 {dimension_numbers = #tpu.dot_dimension_numbers<[1], [0], [0], [1], [0, 0, 1, 1], [], []>} : vector<16x8xf32>, vector<8x8xf32>, vector<16x8xf32> -> vector<16x8xf32>
    %c2_111 = arith.constant 2 : index
    %c0_112 = arith.constant 0 : index
    %c0_113 = arith.constant 0 : index
    %154 = vector.load %arg8[%c2_111, %c0_112, %c0_113] : memref<4x8x8xf32, #tpu.memory_space<vmem>>, vector<1x8x8xf32>
    %155 = vector.shape_cast %154 : vector<1x8x8xf32> to vector<8x8xf32>
    %cst_114 = arith.constant dense<0.000000e+00> : vector<16x8xf32>
    %156 = tpu.matmul %147, %155, %cst_114 {dimension_numbers = #tpu.dot_dimension_numbers<[1], [0], [0], [1], [0, 0, 1, 1], [], []>} : vector<16x8xf32>, vector<8x8xf32>, vector<16x8xf32> -> vector<16x8xf32>
    %cst_115 = arith.constant dense<0.000000e+00> : vector<16x16xf32>
    %157 = tpu.matmul %150, %153, %cst_115 {dimension_numbers = #tpu.dot_dimension_numbers<[1], [1], [0], [0], [0, 0, 1, 0], [], []>} : vector<16x8xf32>, vector<16x8xf32>, vector<16x16xf32> -> vector<16x16xf32>
    %cst_116 = arith.constant 0.353553385 : f32
    %158 = vector.broadcast %cst_116 : f32 to vector<16x16xf32>
    %159 = arith.mulf %157, %158 : vector<16x16xf32>
    %cst_117 = arith.constant dense<0xFF800000> : vector<16xf32>
    %160 = vector.multi_reduction <maximumf>, %159, %cst_117 [1] : vector<16x16xf32> to vector<16xf32>
    %161 = vector.shape_cast %160 : vector<16xf32> to vector<16x1xf32>
    %162 = vector.broadcast %161 : vector<16x1xf32> to vector<16x16xf32>
    %163 = arith.subf %159, %162 : vector<16x16xf32>
    %164 = math.exp %163 : vector<16x16xf32>
    %cst_118 = arith.constant dense<0.000000e+00> : vector<16xf32>
    %165 = vector.multi_reduction <add>, %164, %cst_118 [1] : vector<16x16xf32> to vector<16xf32>
    %166 = vector.shape_cast %165 : vector<16xf32> to vector<16x1xf32>
    %167 = vector.broadcast %166 : vector<16x1xf32> to vector<16x16xf32>
    %168 = arith.divf %164, %167 : vector<16x16xf32>
    %cst_119 = arith.constant dense<0.000000e+00> : vector<16x8xf32>
    %169 = tpu.matmul %168, %156, %cst_119 {dimension_numbers = #tpu.dot_dimension_numbers<[1], [0], [0], [1], [0, 0, 1, 1], [], []>} : vector<16x16xf32>, vector<16x8xf32>, vector<16x8xf32> -> vector<16x8xf32>
    %cst_120 = arith.constant dense<0.000000e+00> : vector<8x8xf32>
    %170 = tpu.matmul %134, %169, %cst_120 {dimension_numbers = #tpu.dot_dimension_numbers<[1], [0], [0], [1], [0, 0, 1, 1], [], []>} : vector<8x16xf32>, vector<16x8xf32>, vector<8x8xf32> -> vector<8x8xf32>
    %171 = tpu.concatenate %134, %168 in 0 : vector<8x16xf32>, vector<16x16xf32> -> vector<24x16xf32>
    %cst_121 = arith.constant 0.000000e+00 : f32
    %172 = vector.broadcast %cst_121 : f32 to vector<24x112xf32>
    %173 = tpu.concatenate %171, %172 in 1 : vector<24x16xf32>, vector<24x112xf32> -> vector<24x128xf32>
    %c0_122 = arith.constant 0 : index
    %c2_123 = arith.constant 2 : index
    %c0_124 = arith.constant 0 : index
    %c0_125 = arith.constant 0 : index
    %174 = vector.load %arg12[%c0_122, %c2_123, %c0_124, %c0_125] : memref<1x4x24x128xf32, #tpu.memory_space<vmem>>, vector<1x1x24x128xf32>
    %175 = vector.shape_cast %174 : vector<1x1x24x128xf32> to vector<24x128xf32>
    %176 = vector.shape_cast %173 : vector<24x128xf32> to vector<1x1x24x128xf32>
    tpu.vector_store %arg12[%c0_122, %c2_123, %c0_124, %c0_125], %176 {strides = array<i32>} : memref<1x4x24x128xf32, #tpu.memory_space<vmem>>, vector<1x1x24x128xf32>,
    %c3 = arith.constant 3 : index
    %c0_126 = arith.constant 0 : index
    %c0_127 = arith.constant 0 : index
    %177 = vector.load %arg2[%c3, %c0_126, %c0_127] : memref<4x32x16xf32, #tpu.memory_space<vmem>>, vector<1x32x16xf32>
    %178 = vector.shape_cast %177 : vector<1x32x16xf32> to vector<32x16xf32>
    %cst_128 = arith.constant dense<0.000000e+00> : vector<8x16xf32>
    %179 = tpu.matmul %1, %178, %cst_128 {dimension_numbers = #tpu.dot_dimension_numbers<[1], [0], [0], [1], [0, 0, 1, 1], [], []>} : vector<8x32xf32>, vector<32x16xf32>, vector<8x16xf32> -> vector<8x16xf32>
    %c3_129 = arith.constant 3 : index
    %c0_130 = arith.constant 0 : index
    %c0_131 = arith.constant 0 : index
    %180 = vector.load %arg3[%c3_129, %c0_130, %c0_131] : memref<4x1x16xf32, #tpu.memory_space<vmem>>, vector<1x1x16xf32>
    %181 = vector.shape_cast %180 : vector<1x1x16xf32> to vector<1x16xf32>
    %182 = vector.broadcast %181 : vector<1x16xf32> to vector<8x16xf32>
    %183 = arith.addf %179, %182 : vector<8x16xf32>
    %cst_132 = arith.constant dense<0xFF800000> : vector<8xf32>
    %184 = vector.multi_reduction <maximumf>, %183, %cst_132 [1] : vector<8x16xf32> to vector<8xf32>
    %185 = vector.shape_cast %184 : vector<8xf32> to vector<8x1xf32>
    %186 = vector.broadcast %185 : vector<8x1xf32> to vector<8x16xf32>
    %187 = arith.subf %183, %186 : vector<8x16xf32>
    %188 = math.exp %187 : vector<8x16xf32>
    %cst_133 = arith.constant dense<0.000000e+00> : vector<8xf32>
    %189 = vector.multi_reduction <add>, %188, %cst_133 [1] : vector<8x16xf32> to vector<8xf32>
    %190 = vector.shape_cast %189 : vector<8xf32> to vector<8x1xf32>
    %191 = vector.broadcast %190 : vector<8x1xf32> to vector<8x16xf32>
    %192 = arith.divf %188, %191 : vector<8x16xf32>
    %c3_134 = arith.constant 3 : index
    %c0_135 = arith.constant 0 : index
    %c0_136 = arith.constant 0 : index
    %193 = vector.load %arg4[%c3_134, %c0_135, %c0_136] : memref<4x32x8xf32, #tpu.memory_space<vmem>>, vector<1x32x8xf32>
    %194 = vector.shape_cast %193 : vector<1x32x8xf32> to vector<32x8xf32>
    %cst_137 = arith.constant dense<0.000000e+00> : vector<8x8xf32>
    %195 = tpu.matmul %1, %194, %cst_137 {dimension_numbers = #tpu.dot_dimension_numbers<[1], [0], [0], [1], [0, 0, 1, 1], [], []>} : vector<8x32xf32>, vector<32x8xf32>, vector<8x8xf32> -> vector<8x8xf32>
    %c3_138 = arith.constant 3 : index
    %c0_139 = arith.constant 0 : index
    %c0_140 = arith.constant 0 : index
    %196 = vector.load %arg5[%c3_138, %c0_139, %c0_140] : memref<4x1x8xf32, #tpu.memory_space<vmem>>, vector<1x1x8xf32>
    %197 = vector.shape_cast %196 : vector<1x1x8xf32> to vector<1x8xf32>
    %198 = vector.broadcast %197 : vector<1x8xf32> to vector<8x8xf32>
    %199 = arith.addf %195, %198 : vector<8x8xf32>
    %cst_141 = arith.constant dense<0.000000e+00> : vector<16x8xf32>
    %200 = tpu.matmul %192, %199, %cst_141 {dimension_numbers = #tpu.dot_dimension_numbers<[0], [0], [1], [1], [0, 1, 1, 1], [], []>} : vector<8x16xf32>, vector<8x8xf32>, vector<16x8xf32> -> vector<16x8xf32>
    %cst_142 = arith.constant dense<0.000000e+00> : vector<16x1xf32>
    %201 = tpu.matmul %192, %2, %cst_142 {dimension_numbers = #tpu.dot_dimension_numbers<[0], [0], [1], [1], [0, 1, 1, 1], [], []>} : vector<8x16xf32>, vector<8x1xf32>, vector<16x1xf32> -> vector<16x1xf32>
    %cst_143 = arith.constant 9.99999974E-6 : f32
    %202 = vector.broadcast %cst_143 : f32 to vector<16x1xf32>
    %203 = arith.addf %201, %202 : vector<16x1xf32>
    %204 = vector.broadcast %203 : vector<16x1xf32> to vector<16x8xf32>
    %205 = arith.divf %200, %204 : vector<16x8xf32>
    %c3_144 = arith.constant 3 : index
    %c0_145 = arith.constant 0 : index
    %c0_146 = arith.constant 0 : index
    %206 = vector.load %arg6[%c3_144, %c0_145, %c0_146] : memref<4x8x8xf32, #tpu.memory_space<vmem>>, vector<1x8x8xf32>
    %207 = vector.shape_cast %206 : vector<1x8x8xf32> to vector<8x8xf32>
    %cst_147 = arith.constant dense<0.000000e+00> : vector<16x8xf32>
    %208 = tpu.matmul %205, %207, %cst_147 {dimension_numbers = #tpu.dot_dimension_numbers<[1], [0], [0], [1], [0, 0, 1, 1], [], []>} : vector<16x8xf32>, vector<8x8xf32>, vector<16x8xf32> -> vector<16x8xf32>
    %c3_148 = arith.constant 3 : index
    %c0_149 = arith.constant 0 : index
    %c0_150 = arith.constant 0 : index
    %209 = vector.load %arg7[%c3_148, %c0_149, %c0_150] : memref<4x8x8xf32, #tpu.memory_space<vmem>>, vector<1x8x8xf32>
    %210 = vector.shape_cast %209 : vector<1x8x8xf32> to vector<8x8xf32>
    %cst_151 = arith.constant dense<0.000000e+00> : vector<16x8xf32>
    %211 = tpu.matmul %205, %210, %cst_151 {dimension_numbers = #tpu.dot_dimension_numbers<[1], [0], [0], [1], [0, 0, 1, 1], [], []>} : vector<16x8xf32>, vector<8x8xf32>, vector<16x8xf32> -> vector<16x8xf32>
    %c3_152 = arith.constant 3 : index
    %c0_153 = arith.constant 0 : index
    %c0_154 = arith.constant 0 : index
    %212 = vector.load %arg8[%c3_152, %c0_153, %c0_154] : memref<4x8x8xf32, #tpu.memory_space<vmem>>, vector<1x8x8xf32>
    %213 = vector.shape_cast %212 : vector<1x8x8xf32> to vector<8x8xf32>
    %cst_155 = arith.constant dense<0.000000e+00> : vector<16x8xf32>
    %214 = tpu.matmul %205, %213, %cst_155 {dimension_numbers = #tpu.dot_dimension_numbers<[1], [0], [0], [1], [0, 0, 1, 1], [], []>} : vector<16x8xf32>, vector<8x8xf32>, vector<16x8xf32> -> vector<16x8xf32>
    %cst_156 = arith.constant dense<0.000000e+00> : vector<16x16xf32>
    %215 = tpu.matmul %208, %211, %cst_156 {dimension_numbers = #tpu.dot_dimension_numbers<[1], [1], [0], [0], [0, 0, 1, 0], [], []>} : vector<16x8xf32>, vector<16x8xf32>, vector<16x16xf32> -> vector<16x16xf32>
    %cst_157 = arith.constant 0.353553385 : f32
    %216 = vector.broadcast %cst_157 : f32 to vector<16x16xf32>
    %217 = arith.mulf %215, %216 : vector<16x16xf32>
    %cst_158 = arith.constant dense<0xFF800000> : vector<16xf32>
    %218 = vector.multi_reduction <maximumf>, %217, %cst_158 [1] : vector<16x16xf32> to vector<16xf32>
    %219 = vector.shape_cast %218 : vector<16xf32> to vector<16x1xf32>
    %220 = vector.broadcast %219 : vector<16x1xf32> to vector<16x16xf32>
    %221 = arith.subf %217, %220 : vector<16x16xf32>
    %222 = math.exp %221 : vector<16x16xf32>
    %cst_159 = arith.constant dense<0.000000e+00> : vector<16xf32>
    %223 = vector.multi_reduction <add>, %222, %cst_159 [1] : vector<16x16xf32> to vector<16xf32>
    %224 = vector.shape_cast %223 : vector<16xf32> to vector<16x1xf32>
    %225 = vector.broadcast %224 : vector<16x1xf32> to vector<16x16xf32>
    %226 = arith.divf %222, %225 : vector<16x16xf32>
    %cst_160 = arith.constant dense<0.000000e+00> : vector<16x8xf32>
    %227 = tpu.matmul %226, %214, %cst_160 {dimension_numbers = #tpu.dot_dimension_numbers<[1], [0], [0], [1], [0, 0, 1, 1], [], []>} : vector<16x16xf32>, vector<16x8xf32>, vector<16x8xf32> -> vector<16x8xf32>
    %cst_161 = arith.constant dense<0.000000e+00> : vector<8x8xf32>
    %228 = tpu.matmul %192, %227, %cst_161 {dimension_numbers = #tpu.dot_dimension_numbers<[1], [0], [0], [1], [0, 0, 1, 1], [], []>} : vector<8x16xf32>, vector<16x8xf32>, vector<8x8xf32> -> vector<8x8xf32>
    %229 = tpu.concatenate %192, %226 in 0 : vector<8x16xf32>, vector<16x16xf32> -> vector<24x16xf32>
    %cst_162 = arith.constant 0.000000e+00 : f32
    %230 = vector.broadcast %cst_162 : f32 to vector<24x112xf32>
    %231 = tpu.concatenate %229, %230 in 1 : vector<24x16xf32>, vector<24x112xf32> -> vector<24x128xf32>
    %c0_163 = arith.constant 0 : index
    %c3_164 = arith.constant 3 : index
    %c0_165 = arith.constant 0 : index
    %c0_166 = arith.constant 0 : index
    %232 = vector.load %arg12[%c0_163, %c3_164, %c0_165, %c0_166] : memref<1x4x24x128xf32, #tpu.memory_space<vmem>>, vector<1x1x24x128xf32>
    %233 = vector.shape_cast %232 : vector<1x1x24x128xf32> to vector<24x128xf32>
    %234 = vector.shape_cast %231 : vector<24x128xf32> to vector<1x1x24x128xf32>
    tpu.vector_store %arg12[%c0_163, %c3_164, %c0_165, %c0_166], %234 {strides = array<i32>} : memref<1x4x24x128xf32, #tpu.memory_space<vmem>>, vector<1x1x24x128xf32>,
    %235 = tpu.concatenate %54, %112, %170, %228 in 1 : vector<8x8xf32>, vector<8x8xf32>, vector<8x8xf32>, vector<8x8xf32> -> vector<8x32xf32>
    %c0_167 = arith.constant 0 : index
    %c0_168 = arith.constant 0 : index
    %236 = vector.load %arg9[%c0_167, %c0_168] : memref<32x32xf32, #tpu.memory_space<vmem>>, vector<32x32xf32>
    %cst_169 = arith.constant dense<0.000000e+00> : vector<8x32xf32>
    %237 = tpu.matmul %235, %236, %cst_169 {dimension_numbers = #tpu.dot_dimension_numbers<[1], [0], [0], [1], [0, 0, 1, 1], [], []>} : vector<8x32xf32>, vector<32x32xf32>, vector<8x32xf32> -> vector<8x32xf32>
    %c0_170 = arith.constant 0 : index
    %c0_171 = arith.constant 0 : index
    %238 = vector.load %arg10[%c0_170, %c0_171] : memref<1x32xf32, #tpu.memory_space<vmem>>, vector<1x32xf32>
    %239 = vector.broadcast %238 : vector<1x32xf32> to vector<8x32xf32>
    %240 = arith.addf %237, %239 : vector<8x32xf32>
    %c0_172 = arith.constant 0 : index
    %c0_173 = arith.constant 0 : index
    %c0_174 = arith.constant 0 : index
    %241 = vector.load %arg11[%c0_172, %c0_173, %c0_174] : memref<1x8x32xf32, #tpu.memory_space<vmem>>, vector<1x8x32xf32>
    %242 = vector.shape_cast %241 : vector<1x8x32xf32> to vector<8x32xf32>
    %243 = vector.shape_cast %240 : vector<8x32xf32> to vector<1x8x32xf32>
    tpu.vector_store %arg11[%c0_172, %c0_173, %c0_174], %243 {strides = array<i32>} : memref<1x8x32xf32, #tpu.memory_space<vmem>>, vector<1x8x32xf32>,
    return
  }
  func.func @transform_0(%arg0: i32) -> (i32, i32, i32) {
    %c0_i32 = arith.constant 0 : i32
    %c0_i32_0 = arith.constant 0 : i32
    %c0_i32_1 = arith.constant 0 : i32
    return %arg0, %c0_i32, %c0_i32_0 : i32, i32, i32
  }
  func.func @transform_1(%arg0: i32) -> (i32, i32, i32) {
    %c0_i32 = arith.constant 0 : i32
    %c0_i32_0 = arith.constant 0 : i32
    %c0_i32_1 = arith.constant 0 : i32
    %c0_i32_2 = arith.constant 0 : i32
    return %c0_i32, %c0_i32_0, %c0_i32_1 : i32, i32, i32
  }
  func.func @transform_2(%arg0: i32) -> (i32, i32, i32) {
    %c0_i32 = arith.constant 0 : i32
    %c0_i32_0 = arith.constant 0 : i32
    %c0_i32_1 = arith.constant 0 : i32
    %c0_i32_2 = arith.constant 0 : i32
    return %c0_i32, %c0_i32_0, %c0_i32_1 : i32, i32, i32
  }
  func.func @transform_3(%arg0: i32) -> (i32, i32, i32) {
    %c0_i32 = arith.constant 0 : i32
    %c0_i32_0 = arith.constant 0 : i32
    %c0_i32_1 = arith.constant 0 : i32
    %c0_i32_2 = arith.constant 0 : i32
    return %c0_i32, %c0_i32_0, %c0_i32_1 : i32, i32, i32
  }
  func.func @transform_4(%arg0: i32) -> (i32, i32, i32) {
    %c0_i32 = arith.constant 0 : i32
    %c0_i32_0 = arith.constant 0 : i32
    %c0_i32_1 = arith.constant 0 : i32
    %c0_i32_2 = arith.constant 0 : i32
    return %c0_i32, %c0_i32_0, %c0_i32_1 : i32, i32, i32
  }
  func.func @transform_5(%arg0: i32) -> (i32, i32, i32) {
    %c0_i32 = arith.constant 0 : i32
    %c0_i32_0 = arith.constant 0 : i32
    %c0_i32_1 = arith.constant 0 : i32
    %c0_i32_2 = arith.constant 0 : i32
    return %c0_i32, %c0_i32_0, %c0_i32_1 : i32, i32, i32
  }
  func.func @transform_6(%arg0: i32) -> (i32, i32, i32) {
    %c0_i32 = arith.constant 0 : i32
    %c0_i32_0 = arith.constant 0 : i32
    %c0_i32_1 = arith.constant 0 : i32
    %c0_i32_2 = arith.constant 0 : i32
    return %c0_i32, %c0_i32_0, %c0_i32_1 : i32, i32, i32
  }
  func.func @transform_7(%arg0: i32) -> (i32, i32, i32) {
    %c0_i32 = arith.constant 0 : i32
    %c0_i32_0 = arith.constant 0 : i32
    %c0_i32_1 = arith.constant 0 : i32
    %c0_i32_2 = arith.constant 0 : i32
    return %c0_i32, %c0_i32_0, %c0_i32_1 : i32, i32, i32
  }
  func.func @transform_8(%arg0: i32) -> (i32, i32) {
    %c0_i32 = arith.constant 0 : i32
    %c0_i32_0 = arith.constant 0 : i32
    %c0_i32_1 = arith.constant 0 : i32
    return %c0_i32, %c0_i32_0 : i32, i32
  }
  func.func @transform_9(%arg0: i32) -> (i32, i32) {
    %c0_i32 = arith.constant 0 : i32
    %c0_i32_0 = arith.constant 0 : i32
    %c0_i32_1 = arith.constant 0 : i32
    return %c0_i32, %c0_i32_0 : i32, i32
  }
  func.func @transform_10(%arg0: i32) -> (i32, i32, i32) {
    %c0_i32 = arith.constant 0 : i32
    %c0_i32_0 = arith.constant 0 : i32
    %c0_i32_1 = arith.constant 0 : i32
    return %arg0, %c0_i32, %c0_i32_0 : i32, i32, i32
  }
  func.func @transform_11(%arg0: i32) -> (i32, i32, i32, i32) {
    %c0_i32 = arith.constant 0 : i32
    %c0_i32_0 = arith.constant 0 : i32
    %c0_i32_1 = arith.constant 0 : i32
    %c0_i32_2 = arith.constant 0 : i32
    return %arg0, %c0_i32, %c0_i32_0, %c0_i32_1 : i32, i32, i32, i32
  }
}

</mosaic_0001>

<bundles_post_ra>
// kernel: split.8
= control target key start
LH: loop header
LB: loop body
LE: loop exit
PB: predicated region body
PF: predicated region fallthrough
CT: control target
= control target key end

     0   :  { %v3_v0 = vlaneseq  ;;  %s47_s10 = smov 96   ;;  %s82_s0 = inlined_call_operand.vmem [shape: f32[32,64], index: 0, kind: input, shape index: {}]   ;;  %s83_s1 = inlined_call_operand.vmem [shape: f32[32,32], index: 1, kind: output, shape index: {}]  }
   0x1   :  { %v42_v2 = vld [vmem:[%s82_s0 + $0x10] sm:$0xff]  ;;  %v2_v3 = vld [vmem:[%s82_s0] sm:$0xff]  ;;  %v44_v6 = vld [vmem:[%s82_s0 + $0x18] sm:$0xff] }
   0x2   :  { %v4_v1 = vand.u32 127, %v3_v0  ;;  %v40_v7 = vld [vmem:[%s82_s0 + $0x8] sm:$0xff] }
   0x4   :  { %vm5_vm0 = vcmp.lt.s32.totalorder %v4_v1, 32 }
   0x5   :  { %v25_v4 = vsel %vm5_vm0, 0, %v42_v2  ;;  %v6_v5 = vsel %vm5_vm0, 0, %v2_v3  ;;  %v35_v8 = vsel %vm5_vm0, 0, %v44_v6  ;;  %v15_v9 = vsel %vm5_vm0, 0, %v40_v7 }
   0x6   :  { %26 = vrot.lane.b32.xlu1 %v25_v4, %s47_s10  ;;  %7 = vrot.lane.b32.xlu0 %v6_v5, %s47_s10 }
   0xe   :  { %36 = vrot.lane.b32.xlu1 %v35_v8, %s47_s10  ;;  %16 = vrot.lane.b32.xlu0 %v15_v9, %s47_s10 }
  0x78   :  { %v27_v10 = vpop.permute.xlu1 %26  ;;  %v8_v11 = vpop.permute.xlu0 %7 }
  0x79   :  { %43 = vst [vmem:[%s83_s1 + $0x10] sm:$0xff] %v27_v10 }
  0x7a   :  { %9 = vst [vmem:[%s83_s1] sm:$0xff] %v8_v11 }
  0x80   :  { %v37_v12 = vpop.permute.xlu1 %36  ;;  %v17_v13 = vpop.permute.xlu0 %16 }
  0x81   :  { %45 = vst [vmem:[%s83_s1 + $0x18] sm:$0xff] %v37_v12 }
  0x82   :  { %41 = vst [vmem:[%s83_s1 + $0x8] sm:$0xff] %v17_v13 }

// kernel: split.7
= control target key start
LH: loop header
LB: loop body
LE: loop exit
PB: predicated region body
PF: predicated region fallthrough
CT: control target
= control target key end

     0   :  { %s65_s0 = inlined_call_operand.vmem [shape: f32[32,64], index: 0, kind: input, shape index: {}]   ;;  %s66_s1 = inlined_call_operand.vmem [shape: bf16[32,32], index: 1, kind: output, shape index: {}]  }
   0x1   :  { %v2_v0 = vld [vmem:[%s65_s0] sm:$0xff]  ;;  %v20_v1 = vld [vmem:[%s65_s0 + $0x8] sm:$0xff]  ;;  %v22_v2 = vld [vmem:[%s65_s0 + $0x10] sm:$0xff] }
   0x2   :  { %v29_v3 = vpack.c.bf16 %v20_v1, %v2_v0  ;;  %v24_v4 = vld [vmem:[%s65_s0 + $0x18] sm:$0xff] }
   0x3   :  { %v34_v5 = vpack.c.bf16 %v24_v4, %v22_v2 }
   0x4   :  { %30 = vst [vmem:[%s66_s1] sm:$0xff] %v29_v3  }
   0x5   :  { %36 = vst [vmem:[%s66_s1 + $0x8] sm:$0xff] %v34_v5  }

</bundles_post_ra>
